<compile_context>
chip_gen: v6e
topology: v6e:2x2x1
jax: 0.10.0
libtpu: 0.0.40
codegen_flags: <defaults>
</compile_context>

<pallas_src>
import jax
import jax.numpy as jnp
from jax.experimental import pallas as pl
from jax.experimental.pallas import tpu as pltpu


def _round_up(x, m):
    return ((x + m - 1) // m) * m


def _vmem_limit_bytes():
    """~3/4 of physical VMEM: ~96 MiB on v5e/v6e (128 MiB), ~48 MiB on v7x (64 MiB)."""
    try:
        cap = pltpu.get_tpu_info().vmem_capacity_bytes
    except Exception:
        cap = 64 * 1024 * 1024            # conservative (v7x-sized) fallback
    return int(min(cap * 3 // 4, 100 * 1024 * 1024))


# --------------------------- kernels ---------------------------

def _fused_small_kernel(a_ref, x_ref, w1_ref, b1_ref, w2_ref, b2_ref,
                        wc_ref, bc_ref, out_ref):
    """Whole GCN forward for small graphs; everything resident in VMEM.
    A is read from HBM exactly once, no intermediate HBM round-trips."""
    a = a_ref[...]                                                    # bf16
    xw1 = jnp.dot(x_ref[...], w1_ref[...],
                  preferred_element_type=jnp.float32)
    h1 = jnp.dot(a, xw1.astype(jnp.bfloat16),
                 preferred_element_type=jnp.float32) + b1_ref[...]
    h1 = jnp.maximum(h1, 0.0)
    hw2 = jnp.dot(h1.astype(jnp.bfloat16), w2_ref[...],
                  preferred_element_type=jnp.float32)
    h2 = jnp.dot(a, hw2.astype(jnp.bfloat16),
                 preferred_element_type=jnp.float32) + b2_ref[...]
    h2 = jnp.maximum(h2, 0.0)
    out_ref[...] = jnp.dot(h2.astype(jnp.bfloat16), wc_ref[...],
                           preferred_element_type=jnp.float32) + bc_ref[...]


def _project_kernel(x_ref, w1_ref, out_ref):
    """out = X @ W1 (used when F > H so the A-aggregation streams an H-wide operand)."""
    out_ref[...] = jnp.dot(x_ref[...], w1_ref[...],
                           preferred_element_type=jnp.float32).astype(out_ref.dtype)


def _layer1_ax_kernel(a_ref, x_ref, w1_ref, b1_ref, w2_ref, out_ref, acc_ref):
    """F <= H path.  acc = sum_k A[i,k] @ X[k]  (O(N^2) matmul at width F_pad)
    finalize: out = ReLU(acc @ W1 + b1) @ W2    (layer-2 pre-multiplied input)."""
    k = pl.program_id(1)

    @pl.when(k == 0)
    def _():
        acc_ref[...] = jnp.zeros_like(acc_ref)

    acc_ref[...] += jnp.dot(a_ref[...], x_ref[...],
                            preferred_element_type=jnp.float32)

    @pl.when(k == pl.num_programs(1) - 1)
    def _():
        h = jnp.dot(acc_ref[...].astype(jnp.bfloat16), w1_ref[...],
                    preferred_element_type=jnp.float32) + b1_ref[...]
        h = jnp.maximum(h, 0.0)
        out_ref[...] = jnp.dot(h.astype(jnp.bfloat16), w2_ref[...],
                               preferred_element_type=jnp.float32
                               ).astype(out_ref.dtype)


def _agg_project_kernel(a_ref, m_ref, b_ref, w_ref, pb_ref, out_ref, acc_ref):
    """Generic: acc = sum_k A[i,k] @ M[k]; finalize: out = ReLU(acc+b) @ W + pb.
    Used for the F>H layer-1 path (W=W2, pb=0) and for layer 2 (W=Wc, pb=bc)."""
    k = pl.program_id(1)

    @pl.when(k == 0)
    def _():
        acc_ref[...] = jnp.zeros_like(acc_ref)

    acc_ref[...] += jnp.dot(a_ref[...], m_ref[...],
                            preferred_element_type=jnp.float32)

    @pl.when(k == pl.num_programs(1) - 1)
    def _():
        h = jnp.maximum(acc_ref[...] + b_ref[...], 0.0)
        out_ref[...] = (jnp.dot(h.astype(jnp.bfloat16), w_ref[...],
                                preferred_element_type=jnp.float32)
                        + pb_ref[...]).astype(out_ref.dtype)


# --------------------------- wrapper ---------------------------

def _build_norm_adj(edge_index, num_nodes):
    """Dense D^{-1/2} (A + remaining self loops) D^{-1/2}, matching PyG gcn_norm:
    existing self-loop edges collapse to weight 1 (not summed with the added one)."""
    src = edge_index[0]
    dst = edge_index[1]
    not_self = (src != dst).astype(jnp.float32)
    a = jnp.zeros((num_nodes, num_nodes), jnp.float32).at[dst, src].add(not_self)
    a = a + jnp.eye(num_nodes, dtype=jnp.float32)      # one self loop per node
    deg = a.sum(axis=1)
    d_inv_sqrt = jnp.where(deg > 0, jax.lax.rsqrt(deg), 0.0)
    return d_inv_sqrt[:, None] * a * d_inv_sqrt[None, :]


def gcn_forward(x, edge_index, params):
    """Full GCN forward. x: (N, F) f32, edge_index: (2, E) i32 -> (N, C) f32."""
    n, feat = x.shape
    hidden = params["w1"].shape[1]
    n_cls = params["wc"].shape[1]

    a = _build_norm_adj(edge_index, n)

    # ---- lane-dense padded geometry ----
    f_pad = _round_up(feat, 128)
    h_pad = _round_up(hidden, 128)
    c_pad = _round_up(n_cls, 128)

    # Weights bf16 (native MXU rate, half the resident VMEM); biases stay f32.
    w1 = jnp.zeros((f_pad, h_pad), jnp.bfloat16).at[:feat, :hidden].set(
        params["w1"].astype(jnp.bfloat16))
    b1 = jnp.zeros((1, h_pad), jnp.float32).at[:, :hidden].set(
        params["b1"].reshape(1, hidden))
    w2 = jnp.zeros((h_pad, h_pad), jnp.bfloat16).at[:hidden, :hidden].set(
        params["w2"].astype(jnp.bfloat16))
    b2 = jnp.zeros((1, h_pad), jnp.float32).at[:, :hidden].set(
        params["b2"].reshape(1, hidden))
    wc = jnp.zeros((h_pad, c_pad), jnp.bfloat16).at[:hidden, :n_cls].set(
        params["wc"].astype(jnp.bfloat16))
    bc = jnp.zeros((1, c_pad), jnp.float32).at[:, :n_cls].set(
        params["bc"].reshape(1, n_cls))

    vmem_limit = _vmem_limit_bytes()

    # ---- small-graph path: single fused kernel, A and activations stay in VMEM ----
    # TODO(synk): on v7x this uses one TensorCore; a 2-row-tile variant would trade
    # the fusion (second A read) for 2-TC parallelism on that chip.
    if n <= 512:
        n_pad = _round_up(n, 128)
        a_p = jnp.zeros((n_pad, n_pad), jnp.bfloat16).at[:n, :n].set(
            a.astype(jnp.bfloat16))
        x_p = jnp.zeros((n_pad, f_pad), jnp.bfloat16).at[:n, :feat].set(
            x.astype(jnp.bfloat16))
        out_p = pl.pallas_call(
            _fused_small_kernel,
            out_shape=jax.ShapeDtypeStruct((n_pad, c_pad), jnp.float32),
            compiler_params=pltpu.CompilerParams(vmem_limit_bytes=vmem_limit),
        )(a_p, x_p, w1, b1, w2, b2, wc, bc)
        return out_p[:n, :n_cls]

    # ---- large-graph path: tiled A aggregation (row-parallel, k-reduction) ----
    n_pad = _round_up(n, 512)
    tm = 512
    tk = next(c for c in (2048, 1024, 512) if n_pad % c == 0)
    grid = (n_pad // tm, n_pad // tk)

    a_p = jnp.zeros((n_pad, n_pad), jnp.bfloat16).at[:n, :n].set(
        a.astype(jnp.bfloat16))
    x_p = jnp.zeros((n_pad, f_pad), jnp.bfloat16).at[:n, :feat].set(
        x.astype(jnp.bfloat16))
    zeros_h = jnp.zeros((1, h_pad), jnp.float32)

    cparams = pltpu.CompilerParams(
        dimension_semantics=("parallel", "arbitrary"),
        vmem_limit_bytes=vmem_limit,
    )

    if f_pad <= h_pad:
        # Layer 1 as (A @ X) @ W1: stream the narrower X operand, fuse the
        # W1 matmul + ReLU + layer-2 W2 pre-multiply into the finalize.
        hw2 = pl.pallas_call(
            _layer1_ax_kernel,
            out_shape=jax.ShapeDtypeStruct((n_pad, h_pad), jnp.bfloat16),
            grid_spec=pltpu.PrefetchScalarGridSpec(
                num_scalar_prefetch=0,
                grid=grid,
                in_specs=[
                    pl.BlockSpec((tm, tk), lambda i, k: (i, k)),      # A tile
                    pl.BlockSpec((tk, f_pad), lambda i, k: (k, 0)),   # X tile
                    pl.BlockSpec((f_pad, h_pad), lambda i, k: (0, 0)),
                    pl.BlockSpec((1, h_pad), lambda i, k: (0, 0)),
                    pl.BlockSpec((h_pad, h_pad), lambda i, k: (0, 0)),
                ],
                out_specs=pl.BlockSpec((tm, h_pad), lambda i, k: (i, 0)),
                scratch_shapes=[pltpu.VMEM((tm, f_pad), jnp.float32)],
            ),
            compiler_params=cparams,
        )(a_p, x_p, w1, b1, w2)
    else:
        # F > H (Cora/Pubmed-style): project X@W1 once so the A aggregation
        # streams an h_pad-wide operand instead of re-reading the wide X.
        xw1 = pl.pallas_call(
            _project_kernel,
            out_shape=jax.ShapeDtypeStruct((n_pad, h_pad), jnp.bfloat16),
            grid_spec=pltpu.PrefetchScalarGridSpec(
                num_scalar_prefetch=0,
                grid=(n_pad // tm,),
                in_specs=[
                    pl.BlockSpec((tm, f_pad), lambda i: (i, 0)),
                    pl.BlockSpec((f_pad, h_pad), lambda i: (0, 0)),
                ],
                out_specs=pl.BlockSpec((tm, h_pad), lambda i: (i, 0)),
            ),
            compiler_params=pltpu.CompilerParams(
                dimension_semantics=("parallel",),
                vmem_limit_bytes=vmem_limit),
        )(x_p, w1)

        hw2 = pl.pallas_call(
            _agg_project_kernel,
            out_shape=jax.ShapeDtypeStruct((n_pad, h_pad), jnp.bfloat16),
            grid_spec=pltpu.PrefetchScalarGridSpec(
                num_scalar_prefetch=0,
                grid=grid,
                in_specs=[
                    pl.BlockSpec((tm, tk), lambda i, k: (i, k)),      # A tile
                    pl.BlockSpec((tk, h_pad), lambda i, k: (k, 0)),   # XW1 tile
                    pl.BlockSpec((1, h_pad), lambda i, k: (0, 0)),    # b1
                    pl.BlockSpec((h_pad, h_pad), lambda i, k: (0, 0)),  # W2
                    pl.BlockSpec((1, h_pad), lambda i, k: (0, 0)),    # zero post-bias
                ],
                out_specs=pl.BlockSpec((tm, h_pad), lambda i, k: (i, 0)),
                scratch_shapes=[pltpu.VMEM((tm, h_pad), jnp.float32)],
            ),
            compiler_params=cparams,
        )(a_p, xw1, b1, w2, zeros_h)

    # Layer 2 + classifier: acc = A @ (H1 W2); out = ReLU(acc+b2) @ Wc + bc.
    out_p = pl.pallas_call(
        _agg_project_kernel,
        out_shape=jax.ShapeDtypeStruct((n_pad, c_pad), jnp.float32),
        grid_spec=pltpu.PrefetchScalarGridSpec(
            num_scalar_prefetch=0,
            grid=grid,
            in_specs=[
                pl.BlockSpec((tm, tk), lambda i, k: (i, k)),          # A tile
                pl.BlockSpec((tk, h_pad), lambda i, k: (k, 0)),       # (H1 W2) tile
                pl.BlockSpec((1, h_pad), lambda i, k: (0, 0)),        # b2
                pl.BlockSpec((h_pad, c_pad), lambda i, k: (0, 0)),    # Wc
                pl.BlockSpec((1, c_pad), lambda i, k: (0, 0)),        # bc
            ],
            out_specs=pl.BlockSpec((tm, c_pad), lambda i, k: (i, 0)),
            scratch_shapes=[pltpu.VMEM((tm, h_pad), jnp.float32)],
        ),
        compiler_params=cparams,
    )(a_p, hw2, b2, wc, bc)

    return out_p[:n, :n_cls]


# --------------------------- reference & init ---------------------------

def _gcn_reference(x, edge_index, params):
    a = _build_norm_adj(edge_index, x.shape[0])
    h = jnp.maximum(a @ (x @ params["w1"]) + params["b1"], 0.0)
    h = jnp.maximum(a @ (h @ params["w2"]) + params["b2"], 0.0)
    return h @ params["wc"] + params["bc"]


def init_params(key, num_node_features, hidden_channels, num_classes):
    """Deterministic glorot-uniform weights, zero biases (shapes per module)."""
    k1, k2, k3 = jax.random.split(key, 3)

    def glorot(k, fan_in, fan_out):
        lim = jnp.sqrt(6.0 / (fan_in + fan_out))
        return jax.random.uniform(k, (fan_in, fan_out), jnp.float32, -lim, lim)

    return {
        "w1": glorot(k1, num_node_features, hidden_channels),
        "b1": jnp.zeros((hidden_channels,), jnp.float32),
        "w2": glorot(k2, hidden_channels, hidden_channels),
        "b2": jnp.zeros((hidden_channels,), jnp.float32),
        "wc": glorot(k3, hidden_channels, num_classes),
        "bc": jnp.zeros((num_classes,), jnp.float32),
    }


if __name__ == "__main__":
    num_nodes = 16
    num_node_features = 8
    hidden_channels = 32
    num_classes = 4
    num_edges = 40

    key = jax.random.PRNGKey(0)
    kx, ke, kp = jax.random.split(key, 3)

    x = jax.random.normal(kx, (num_nodes, num_node_features), jnp.float32)
    edge_index = jax.random.randint(ke, (2, num_edges), 0, num_nodes,
                                    dtype=jnp.int32)
    params = init_params(kp, num_node_features, hidden_channels, num_classes)

    out = gcn_forward(x, edge_index, params)
    out = jax.block_until_ready(out)

    assert out.shape == (num_nodes, num_classes)
    assert out.dtype == jnp.float32
    assert bool(jnp.all(jnp.isfinite(out)))

    # Loose check vs. f32 reference (kernel uses bf16 A / weights / activations).
    ref = _gcn_reference(x, edge_index, params)
    assert bool(jnp.allclose(out, ref, atol=1e-1, rtol=1e-1))

    print("KERNEL_OK")
</pallas_src>

<mosaic_0001>
module attributes {stable_mosaic.version = 11 : i64} {
  func.func @_fused_small_kernel(%arg0: memref<128x128xbf16, #tpu.memory_space<vmem>>, %arg1: memref<128x128xbf16, #tpu.memory_space<vmem>>, %arg2: memref<128x128xbf16, #tpu.memory_space<vmem>>, %arg3: memref<1x128xf32, #tpu.memory_space<vmem>>, %arg4: memref<128x128xbf16, #tpu.memory_space<vmem>>, %arg5: memref<1x128xf32, #tpu.memory_space<vmem>>, %arg6: memref<128x128xbf16, #tpu.memory_space<vmem>>, %arg7: memref<1x128xf32, #tpu.memory_space<vmem>>, %arg8: memref<128x128xf32, #tpu.memory_space<vmem>>) attributes {dimension_semantics = [], scalar_prefetch = 0 : i64, scratch_operands = 0 : i64, tpu.core_type = #tpu.core_type<tc>} {
    %c0 = arith.constant 0 : index
    %c0_0 = arith.constant 0 : index
    %0 = vector.load %arg0[%c0, %c0_0] : memref<128x128xbf16, #tpu.memory_space<vmem>>, vector<128x128xbf16>
    %c0_1 = arith.constant 0 : index
    %c0_2 = arith.constant 0 : index
    %1 = vector.load %arg1[%c0_1, %c0_2] : memref<128x128xbf16, #tpu.memory_space<vmem>>, vector<128x128xbf16>
    %c0_3 = arith.constant 0 : index
    %c0_4 = arith.constant 0 : index
    %2 = vector.load %arg2[%c0_3, %c0_4] : memref<128x128xbf16, #tpu.memory_space<vmem>>, vector<128x128xbf16>
    %cst = arith.constant dense<0.000000e+00> : vector<128x128xf32>
    %3 = tpu.matmul %1, %2, %cst {dimension_numbers = #tpu.dot_dimension_numbers<[1], [0], [0], [1], [0, 0, 1, 1], [], []>} : vector<128x128xbf16>, vector<128x128xbf16>, vector<128x128xf32> -> vector<128x128xf32>
    %4 = arith.truncf %3 : vector<128x128xf32> to vector<128x128xbf16>
    %cst_5 = arith.constant dense<0.000000e+00> : vector<128x128xf32>
    %5 = tpu.matmul %0, %4, %cst_5 {dimension_numbers = #tpu.dot_dimension_numbers<[1], [0], [0], [1], [0, 0, 1, 1], [], []>} : vector<128x128xbf16>, vector<128x128xbf16>, vector<128x128xf32> -> vector<128x128xf32>
    %c0_6 = arith.constant 0 : index
    %c0_7 = arith.constant 0 : index
    %6 = vector.load %arg3[%c0_6, %c0_7] : memref<1x128xf32, #tpu.memory_space<vmem>>, vector<1x128xf32>
    %7 = vector.broadcast %6 : vector<1x128xf32> to vector<128x128xf32>
    %8 = arith.addf %5, %7 : vector<128x128xf32>
    %cst_8 = arith.constant 0.000000e+00 : f32
    %9 = vector.broadcast %cst_8 : f32 to vector<128x128xf32>
    %10 = arith.maximumf %8, %9 : vector<128x128xf32>
    %11 = arith.truncf %10 : vector<128x128xf32> to vector<128x128xbf16>
    %c0_9 = arith.constant 0 : index
    %c0_10 = arith.constant 0 : index
    %12 = vector.load %arg4[%c0_9, %c0_10] : memref<128x128xbf16, #tpu.memory_space<vmem>>, vector<128x128xbf16>
    %cst_11 = arith.constant dense<0.000000e+00> : vector<128x128xf32>
    %13 = tpu.matmul %11, %12, %cst_11 {dimension_numbers = #tpu.dot_dimension_numbers<[1], [0], [0], [1], [0, 0, 1, 1], [], []>} : vector<128x128xbf16>, vector<128x128xbf16>, vector<128x128xf32> -> vector<128x128xf32>
    %14 = arith.truncf %13 : vector<128x128xf32> to vector<128x128xbf16>
    %cst_12 = arith.constant dense<0.000000e+00> : vector<128x128xf32>
    %15 = tpu.matmul %0, %14, %cst_12 {dimension_numbers = #tpu.dot_dimension_numbers<[1], [0], [0], [1], [0, 0, 1, 1], [], []>} : vector<128x128xbf16>, vector<128x128xbf16>, vector<128x128xf32> -> vector<128x128xf32>
    %c0_13 = arith.constant 0 : index
    %c0_14 = arith.constant 0 : index
    %16 = vector.load %arg5[%c0_13, %c0_14] : memref<1x128xf32, #tpu.memory_space<vmem>>, vector<1x128xf32>
    %17 = vector.broadcast %16 : vector<1x128xf32> to vector<128x128xf32>
    %18 = arith.addf %15, %17 : vector<128x128xf32>
    %cst_15 = arith.constant 0.000000e+00 : f32
    %19 = vector.broadcast %cst_15 : f32 to vector<128x128xf32>
    %20 = arith.maximumf %18, %19 : vector<128x128xf32>
    %21 = arith.truncf %20 : vector<128x128xf32> to vector<128x128xbf16>
    %c0_16 = arith.constant 0 : index
    %c0_17 = arith.constant 0 : index
    %22 = vector.load %arg6[%c0_16, %c0_17] : memref<128x128xbf16, #tpu.memory_space<vmem>>, vector<128x128xbf16>
    %cst_18 = arith.constant dense<0.000000e+00> : vector<128x128xf32>
    %23 = tpu.matmul %21, %22, %cst_18 {dimension_numbers = #tpu.dot_dimension_numbers<[1], [0], [0], [1], [0, 0, 1, 1], [], []>} : vector<128x128xbf16>, vector<128x128xbf16>, vector<128x128xf32> -> vector<128x128xf32>
    %c0_19 = arith.constant 0 : index
    %c0_20 = arith.constant 0 : index
    %24 = vector.load %arg7[%c0_19, %c0_20] : memref<1x128xf32, #tpu.memory_space<vmem>>, vector<1x128xf32>
    %25 = vector.broadcast %24 : vector<1x128xf32> to vector<128x128xf32>
    %26 = arith.addf %23, %25 : vector<128x128xf32>
    %c0_21 = arith.constant 0 : index
    %c0_22 = arith.constant 0 : index
    %27 = vector.load %arg8[%c0_21, %c0_22] : memref<128x128xf32, #tpu.memory_space<vmem>>, vector<128x128xf32>
    tpu.vector_store %arg8[%c0_21, %c0_22], %26 {strides = array<i32>} : memref<128x128xf32, #tpu.memory_space<vmem>>, vector<128x128xf32>,
    return
  }
}

</mosaic_0001>

<bundles_post_ra>
// kernel: tpu_custom_call.1
= control target key start
LH: loop header
LB: loop body
LE: loop exit
PB: predicated region body
PF: predicated region fallthrough
CT: control target
= control target key end

     0   :  { %13 = vsyncpa [#allocation3], 0  ;;  %s1630_s0 = inlined_call_operand.hbm [shape: bf16[128,128], index: 0, kind: input, shape index: {}]   ;;  %s1631_s1 = inlined_call_operand.hbm [shape: bf16[128,128], index: 1, kind: input, shape index: {}]   ;;  %s1632_s2 = inlined_call_operand.hbm [shape: bf16[128,128], index: 2, kind: input, shape index: {}]   ;;  %s1633_s3 = inlined_call_operand.vmem [shape: f32[1,128], index: 3, kind: input, shape index: {}]   ;;  %s1634_s4 = inlined_call_operand.hbm [shape: bf16[128,128], index: 4, kind: input, shape index: {}]   ;;  %s1635_s5 = inlined_call_operand.vmem [shape: f32[1,128], index: 5, kind: input, shape index: {}]   ;;  %s1636_s6 = inlined_call_operand.hbm [shape: bf16[128,128], index: 6, kind: input, shape index: {}]   ;;  %s1637_s7 = inlined_call_operand.vmem [shape: f32[1,128], index: 7, kind: input, shape index: {}]   ;;  %s1638_s8 = inlined_call_operand.hbm [shape: f32[128,128], index: 8, kind: output, shape index: {}]  }
   0x1   :  { %14 = vsyncpa [#allocation6], 0 }
   0x2   :  { %15 = vsyncpa [#allocation9], 0 }
   0x3   :  { %16 = vsyncpa [#allocation4], 0  ;;  %s1501_s27 = smov [#allocation5]   ;;  %s1502_s29 = smov [#allocation8]  }
   0x4   :  { %s34_s28 = sshll.u32 %s1501_s27, 4  ;;  %s60_s30 = sshll.u32 %s1502_s29, 4  ;;  %s35_s28 = int_to_ptr.vmem [resolvable:$true] %s34_s28  ;;  %s61_s30 = int_to_ptr.vmem [resolvable:$true] %s60_s30 }
   0x5   :  { %s1381_s9 = scalar_lea.vmem %s35_s28, 1024  ;;  %p1386_p1 = scmp.lt.s32.totalorder %s35_s28, %s35_s28 }
   0x6   :  { %p1382_p0 = scmp.ne.s32.totalorder %s35_s28, %s1381_s9  ;;  %p1387_p2 = scmp.lt.s32.totalorder %s1381_s9, %s1381_s9 }
   0x8   :  { %p1388_p3 = por %p1387_p2, %p1386_p1 }
   0xa   :  { %p1389_p4 = pnand %p1388_p3, %p1382_p0 }
   0xc   :  { %1392 = shalt.err (!%p1389_p4)
}
   0xd   :  { %s1503_s10 = smov 64   ;;  %s1504_s11 = smov 4  }
   0xe   :  { %40 = dma.hbm_to_vmem [thread:$0]  %s1631_s1, 1024, %s35_s28, [#allocation6], %s1503_s10, %s1503_s10, %s1504_s11  }
   0xf   :  { %s1401_s14 = scalar_lea.vmem %s61_s30, 1024  ;;  %p1406_p6 = scmp.lt.s32.totalorder %s61_s30, %s61_s30 }
  0x10   :  { %p1402_p5 = scmp.ne.s32.totalorder %s61_s30, %s1401_s14  ;;  %p1407_p7 = scmp.lt.s32.totalorder %s1401_s14, %s1401_s14 }
  0x12   :  { %p1408_p8 = por %p1407_p7, %p1406_p6 }
  0x14   :  { %p1409_p9 = pnand %p1408_p8, %p1402_p5 }
  0x16   :  { %1412 = shalt.err (!%p1409_p9)
}
  0x17   :  { %66 = dma.hbm_to_vmem [thread:$0]  %s1634_s4, 1024, %s61_s30, [#allocation9], %s1503_s10, %s1503_s10, %s1504_s11  }
  0x18   :  { %s1505_s17 = smov [#allocation2]   ;;  %s1506_s19 = smov [#allocation7]  }
  0x19   :  { %s22_s18 = sshll.u32 %s1505_s17, 4  ;;  %s46_s20 = sshll.u32 %s1506_s19, 4  ;;  %s23_s18 = int_to_ptr.vmem [resolvable:$true] %s22_s18  ;;  %s47_s20 = int_to_ptr.vmem [resolvable:$true] %s46_s20 }
  0x1a   :  { %s1421_s1 = scalar_lea.vmem %s23_s18, 1024  ;;  %p1426_p11 = scmp.lt.s32.totalorder %s23_s18, %s23_s18 }
  0x1b   :  { %p1422_p10 = scmp.ne.s32.totalorder %s23_s18, %s1421_s1  ;;  %p1427_p12 = scmp.lt.s32.totalorder %s1421_s1, %s1421_s1 }
  0x1d   :  { %p1428_p13 = por %p1427_p12, %p1426_p11 }
  0x1f   :  { %p1429_p0 = pnand %p1428_p13, %p1422_p10 }
  0x21   :  { %1432 = shalt.err (!%p1429_p0)
}
  0x22   :  { %28 = dma.hbm_to_vmem [thread:$0]  %s1630_s0, 1024, %s23_s18, [#allocation3], %s1503_s10, %s1503_s10, %s1504_s11  }
  0x23   :  { %s1441_s4 = scalar_lea.vmem %s47_s20, 1024  ;;  %p1446_p2 = scmp.lt.s32.totalorder %s47_s20, %s47_s20 }
  0x24   :  { %p1442_p1 = scmp.ne.s32.totalorder %s47_s20, %s1441_s4  ;;  %p1447_p3 = scmp.lt.s32.totalorder %s1441_s4, %s1441_s4 }
  0x26   :  { %p1448_p4 = por %p1447_p3, %p1446_p2 }
  0x28   :  { %p1449_p5 = pnand %p1448_p4, %p1442_p1 }
  0x2a   :  { %1452 = shalt.err (!%p1449_p5)
}
  0x2b   :  { %52 = dma.hbm_to_vmem [thread:$0]  %s1632_s2, 1024, %s47_s20, [#allocation6], %s1503_s10, %s1503_s10, %s1504_s11  }
  0x2c   :  { %s1507_s25 = smov [#allocation10]  }
  0x2d   :  { %s74_s26 = sshll.u32 %s1507_s25, 4  ;;  %s75_s26 = int_to_ptr.vmem [resolvable:$true] %s74_s26 }
  0x2e   :  { %s1461_s27 = scalar_lea.vmem %s75_s26, 1024  ;;  %p1466_p7 = scmp.lt.s32.totalorder %s75_s26, %s75_s26 }
  0x2f   :  { %p1462_p6 = scmp.ne.s32.totalorder %s75_s26, %s1461_s27  ;;  %p1467_p8 = scmp.lt.s32.totalorder %s1461_s27, %s1461_s27 }
  0x31   :  { %p1468_p9 = por %p1467_p8, %p1466_p7 }
  0x33   :  { %p1469_p10 = pnand %p1468_p9, %p1462_p6 }
  0x35   :  { %1472 = shalt.err (!%p1469_p10)
}
  0x36   :  { %80 = dma.hbm_to_vmem [thread:$0]  %s1636_s6, 1024, %s75_s26, [#allocation9], %s1503_s10, %s1503_s10, %s1504_s11  }
  0x37   :  { %1493 = dma.done.wait [#allocation3], 1024  }
  0x38   :  { %1494 = vsyncadd [#allocation3], 4294966272 }
  0x39   :  { %1495 = dma.done.wait [#allocation6], 2048  }
  0x3a   :  { %1496 = vsyncadd [#allocation6], 4294965248 }
  0x3b   :  { %1497 = dma.done.wait [#allocation9], 2048  }
  0x3c   :  { %1498 = vsyncadd [#allocation9], 4294965248  ;;  %v1333_v0 = vld [vmem:[#allocation7 + $0x38] sm:$0xff]   ;;  %v1334_v1 = vld [vmem:[#allocation7 + $0x30] sm:$0xff]  }
  0x3d   :  { %1147 = vmatprep.subr.bf16.mxu0 %v1333_v0  ;;  %v1335_v2 = vld [vmem:[#allocation7 + $0x28] sm:$0xff]   ;;  %v1336_v3 = vld [vmem:[#allocation7 + $0x20] sm:$0xff]   ;;  %v1337_v5 = vld [vmem:[#allocation7 + $0x18] sm:$0xff]  }
  0x3e   :  { %1148 = vmatpush3.bf16.msra.mxu0 %v1333_v0  ;;  %v1341_v4 = vld [vmem:[#allocation5] sm:$0xff]   ;;  %v1338_v6 = vld [vmem:[#allocation7 + $0x10] sm:$0xff]   ;;  %v1339_v7 = vld [vmem:[#allocation7 + $0x8] sm:$0xff]  }
  0x3f   :  { %1149 = vmatprep.subr.bf16.mxu0 %v1334_v1  ;;  %1163 = vmatprep.mubr.bf16.mxu0 %v1341_v4  ;;  %v1340_v8 = vld [vmem:[#allocation7] sm:$0xff]   ;;  %v1342_v9 = vld [vmem:[#allocation5 + $0x8] sm:$0xff]   ;;  %v1343_v10 = vld [vmem:[#allocation5 + $0x10] sm:$0xff]  }
  0x40   :  { %v1344_v11 = vld [vmem:[#allocation5 + $0x18] sm:$0xff]   ;;  %v1345_v12 = vld [vmem:[#allocation5 + $0x20] sm:$0xff]   ;;  %v1346_v13 = vld [vmem:[#allocation5 + $0x28] sm:$0xff]  }
  0x41   :  { %v1347_v14 = vld [vmem:[#allocation5 + $0x30] sm:$0xff]   ;;  %v1348_v15 = vld [vmem:[#allocation5 + $0x38] sm:$0xff]   ;;  %v1586_v16 = vld [vmem:[#allocation2] sm:$0xff]  }
  0x42   :  { %1150 = vmatpush3.bf16.msra.mxu0 %v1334_v1  ;;  %1195 = vmatprep.mubr.bf16.mxu1 %v1586_v16  ;;  %v1357_v17 = vld [vmem:[#allocation8 + $0x38] sm:$0xff]   ;;  %v1358_v18 = vld [vmem:[#allocation8 + $0x30] sm:$0xff]   ;;  %v1359_v19 = vld [vmem:[#allocation8 + $0x28] sm:$0xff]  }
  0x43   :  { %1151 = vmatprep.subr.bf16.mxu0 %v1335_v2  ;;  %v1360_v20 = vld [vmem:[#allocation8 + $0x20] sm:$0xff]   ;;  %v1361_v21 = vld [vmem:[#allocation8 + $0x18] sm:$0xff]   ;;  %v1589_v46 = vld [vmem:[#allocation2 + $0x8] sm:$0xff]  }
  0x44   :  { %v1591_v47 = vld [vmem:[#allocation2 + $0x10] sm:$0xff]   ;;  %v1595_v48 = vld [vmem:[#allocation2 + $0x18] sm:$0xff]   ;;  %v1597_v49 = vld [vmem:[#allocation2 + $0x20] sm:$0xff]  }
  0x45   :  { %v1601_v50 = vld [vmem:[#allocation2 + $0x28] sm:$0xff]   ;;  %v1603_v51 = vld [vmem:[#allocation2 + $0x30] sm:$0xff]   ;;  %v1607_v52 = vld [vmem:[#allocation2 + $0x38] sm:$0xff]  }
  0x46   :  { %1152 = vmatpush3.bf16.msra.mxu0 %v1335_v2  ;;  %v1362_v53 = vld [vmem:[#allocation8 + $0x10] sm:$0xff]   ;;  %v1363_v54 = vld [vmem:[#allocation8 + $0x8] sm:$0xff]   ;;  %v1364_v55 = vld [vmem:[#allocation8] sm:$0xff]  }
  0x47   :  { %1153 = vmatprep.subr.bf16.mxu0 %v1336_v3  ;;  %v1040_v58 = vld [vmem:[%s1633_s3] ss:$0 sm:$0xff] }
  0x4a   :  { %1154 = vmatpush3.bf16.msra.mxu0 %v1336_v3 }
  0x4b   :  { %1155 = vmatprep.subr.bf16.mxu0 %v1337_v5 }
  0x4e   :  { %1156 = vmatpush3.bf16.msra.mxu0 %v1337_v5 }
  0x4f   :  { %1157 = vmatprep.subr.bf16.mxu0 %v1338_v6 }
  0x52   :  { %1158 = vmatpush3.bf16.msra.mxu0 %v1338_v6 }
  0x53   :  { %1159 = vmatprep.subr.bf16.mxu0 %v1339_v7 }
  0x56   :  { %1160 = vmatpush3.bf16.msra.mxu0 %v1339_v7 }
  0x57   :  { %1161 = vmatprep.subr.bf16.mxu0 %v1340_v8 }
  0x5a   :  { %1162 = vmatpush3.bf16.msra.mxu0 %v1340_v8 }
  0x5b   :  { %1211 = vmatprep.subr.bf16.mxu0 %v1357_v17 }
  0x5d   :  { %1164 = vmatmul.mubr.bf16.vlgmr.msra.gmra.mxu0 %v1342_v9 }
  0x5e   :  { %1167 = vmatprep.mubr.bf16.mxu0 %v1343_v10  ;;  %1212 = vmatpush3.bf16.msra.mxu0 %v1357_v17 }
  0x5f   :  { %1213 = vmatprep.subr.bf16.mxu0 %v1358_v18 }
  0x62   :  { %1214 = vmatpush3.bf16.msra.mxu0 %v1358_v18 }
  0x63   :  { %1215 = vmatprep.subr.bf16.mxu0 %v1359_v19 }
  0x65   :  { %1168 = vmatmul.mubr.bf16.gmra.mxu0 %v1344_v11 }
  0x66   :  { %1171 = vmatprep.mubr.bf16.mxu0 %v1345_v12  ;;  %1216 = vmatpush3.bf16.msra.mxu0 %v1359_v19 }
  0x67   :  { %1217 = vmatprep.subr.bf16.mxu0 %v1360_v20 }
  0x6a   :  { %1218 = vmatpush3.bf16.msra.mxu0 %v1360_v20 }
  0x6b   :  { %1219 = vmatprep.subr.bf16.mxu0 %v1361_v21 }
  0x6d   :  { %1172 = vmatmul.mubr.bf16.gmra.mxu0 %v1346_v13 }
  0x6e   :  { %1175 = vmatprep.mubr.bf16.mxu0 %v1347_v14  ;;  %1220 = vmatpush3.bf16.msra.mxu0 %v1361_v21 }
  0x6f   :  { %1221 = vmatprep.subr.bf16.mxu0 %v1362_v53 }
  0x72   :  { %1222 = vmatpush3.bf16.msra.mxu0 %v1362_v53 }
  0x73   :  { %1223 = vmatprep.subr.bf16.mxu0 %v1363_v54 }
  0x75   :  { %1176 = vmatmul.mubr.bf16.gmra.mxu0 %v1348_v15 }
  0x76   :  { %1224 = vmatpush3.bf16.msra.mxu0 %v1363_v54 }
  0x77   :  { %1225 = vmatprep.subr.bf16.mxu0 %v1364_v55 }
  0x7a   :  { %1226 = vmatpush3.bf16.msra.mxu0 %v1364_v55 }
 0x11d   :  { %v1165_v22 = vpop.f32.mrf.mxu0 }
 0x11f   :  { %v277_v23 = vpop.f32.mrf.mxu0 }
 0x121   :  { %v1166_v24 = vpop.f32.mrf.mxu0 }
 0x122   :  { %v341_v44 = vpack.c.bf16 %v1166_v24, %v1165_v22 }
 0x123   :  { %v280_v25 = vpop.f32.mrf.mxu0 }
 0x124   :  { %v340_v45 = vpack.c.bf16 %v280_v25, %v277_v23 }
 0x125   :  { %v1169_v26 = vpop.f32.mrf.mxu0 }
 0x127   :  { %v293_v27 = vpop.f32.mrf.mxu0 }
 0x129   :  { %v1170_v28 = vpop.f32.mrf.mxu0 }
 0x12a   :  { %v343_v42 = vpack.c.bf16 %v1170_v28, %v1169_v26 }
 0x12b   :  { %v296_v29 = vpop.f32.mrf.mxu0 }
 0x12c   :  { %v342_v43 = vpack.c.bf16 %v296_v29, %v293_v27 }
 0x12d   :  { %v1173_v30 = vpop.f32.mrf.mxu0 }
 0x12f   :  { %v309_v31 = vpop.f32.mrf.mxu0 }
 0x131   :  { %v1174_v32 = vpop.f32.mrf.mxu0 }
 0x132   :  { %v345_v40 = vpack.c.bf16 %v1174_v32, %v1173_v30 }
 0x133   :  { %v312_v33 = vpop.f32.mrf.mxu0 }
 0x134   :  { %v344_v41 = vpack.c.bf16 %v312_v33, %v309_v31 }
 0x135   :  { %v1177_v34 = vpop.f32.mrf.mxu0 }
 0x137   :  { %v325_v35 = vpop.f32.mrf.mxu0 }
 0x139   :  { %v1178_v36 = vpop.f32.mrf.mxu0 }
 0x13a   :  { %v347_v37 = vpack.c.bf16 %v1178_v36, %v1177_v34 }
 0x13b   :  { %v328_v38 = vpop.f32.mrf.mxu0 }
 0x13c   :  { %v346_v39 = vpack.c.bf16 %v328_v38, %v325_v35  ;;  %1179 = vmatprep.subr.bf16.mxu1 %v347_v37 }
 0x13d   :  { %1180 = vmatpush3.bf16.msra.mxu1 %v347_v37 }
 0x13e   :  { %1181 = vmatprep.subr.bf16.mxu1 %v346_v39 }
 0x141   :  { %1182 = vmatpush3.bf16.msra.mxu1 %v346_v39 }
 0x142   :  { %1183 = vmatprep.subr.bf16.mxu1 %v345_v40 }
 0x145   :  { %1184 = vmatpush3.bf16.msra.mxu1 %v345_v40 }
 0x146   :  { %1185 = vmatprep.subr.bf16.mxu1 %v344_v41 }
 0x149   :  { %1186 = vmatpush3.bf16.msra.mxu1 %v344_v41 }
 0x14a   :  { %1187 = vmatprep.subr.bf16.mxu1 %v343_v42 }
 0x14d   :  { %1188 = vmatpush3.bf16.msra.mxu1 %v343_v42 }
 0x14e   :  { %1189 = vmatprep.subr.bf16.mxu1 %v342_v43 }
 0x151   :  { %1190 = vmatpush3.bf16.msra.mxu1 %v342_v43 }
 0x152   :  { %1191 = vmatprep.subr.bf16.mxu1 %v341_v44 }
 0x155   :  { %1192 = vmatpush3.bf16.msra.mxu1 %v341_v44 }
 0x156   :  { %1193 = vmatprep.subr.bf16.mxu1 %v340_v45 }
 0x159   :  { %1194 = vmatpush3.bf16.msra.mxu1 %v340_v45 }
 0x15c   :  { %1196 = vmatmul.mubr.bf16.vlgmr.msra.gmra.mxu1 %v1589_v46 }
 0x15d   :  { %1199 = vmatprep.mubr.bf16.mxu1 %v1591_v47 }
 0x164   :  { %1200 = vmatmul.mubr.bf16.gmra.mxu1 %v1595_v48 }
 0x165   :  { %1203 = vmatprep.mubr.bf16.mxu1 %v1597_v49 }
 0x16c   :  { %1204 = vmatmul.mubr.bf16.gmra.mxu1 %v1601_v50 }
 0x16d   :  { %1207 = vmatprep.mubr.bf16.mxu1 %v1603_v51 }
 0x174   :  { %1208 = vmatmul.mubr.bf16.gmra.mxu1 %v1607_v52 }
 0x175   :  { %1259 = vmatprep.mubr.bf16.mxu1 %v1586_v16 }
 0x21c   :  { %v1197_v56 = vpop.f32.mrf.mxu1 }
 0x21d   :  { %v446_v62 = vadd.f32 %v1197_v56, %v1040_v58  ;;  %v1365_v56 = vld [vmem:[#allocation10 + $0x38] sm:$0xff]  }
 0x21e   :  { %v437_v57 = vpop.f32.mrf.mxu1  ;;  %1275 = vmatprep.subr.bf16.mxu0 %v1365_v56 }
 0x21f   :  { %v438_v60 = vadd.f32 %v1040_v58, %v437_v57  ;;  %v502_v5 = vmax.f32 %v446_v62, 0.0  ;;  %v1366_v57 = vld [vmem:[#allocation10 + $0x30] sm:$0xff]  }
 0x220   :  { %v1198_v59 = vpop.f32.mrf.mxu1 }
 0x221   :  { %v449_v61 = vadd.f32 %v1198_v59, %v1040_v58  ;;  %v500_v3 = vmax.f32 %v438_v60, 0.0  ;;  %v1367_v59 = vld [vmem:[#allocation10 + $0x28] sm:$0xff]   ;;  %v1368_v60 = vld [vmem:[#allocation10 + $0x20] sm:$0xff]  }
 0x222   :  { %v440_v63 = vpop.f32.mrf.mxu1 }
 0x223   :  { %v441_v0 = vadd.f32 %v1040_v58, %v440_v63  ;;  %v503_v1 = vmax.f32 %v449_v61, 0.0 }
 0x224   :  { %v1201_v2 = vpop.f32.mrf.mxu1 }
 0x225   :  { %v501_v4 = vmax.f32 %v441_v0, 0.0  ;;  %v517_v8 = vpack.c.bf16 %v503_v1, %v502_v5  ;;  %v462_v12 = vadd.f32 %v1201_v2, %v1040_v58 }
 0x226   :  { %v453_v6 = vpop.f32.mrf.mxu1 }
 0x227   :  { %v516_v7 = vpack.c.bf16 %v501_v4, %v500_v3  ;;  %v454_v10 = vadd.f32 %v1040_v58, %v453_v6  ;;  %v506_v19 = vmax.f32 %v462_v12, 0.0 }
 0x228   :  { %v1202_v9 = vpop.f32.mrf.mxu1 }
 0x229   :  { %v465_v11 = vadd.f32 %v1202_v9, %v1040_v58  ;;  %1227 = vmatprep.mubr.bf16.mxu0 %v516_v7  ;;  %v504_v17 = vmax.f32 %v454_v10, 0.0 }
 0x22a   :  { %v456_v13 = vpop.f32.mrf.mxu1  ;;  %1228 = vmatmul.mubr.bf16.vlgmr.msra.gmra.mxu0 %v517_v8 }
 0x22b   :  { %v457_v14 = vadd.f32 %v1040_v58, %v456_v13  ;;  %v507_v15 = vmax.f32 %v465_v11, 0.0  ;;  %1276 = vmatpush3.bf16.msra.mxu0 %v1365_v56 }
 0x22c   :  { %v1205_v16 = vpop.f32.mrf.mxu1  ;;  %1277 = vmatprep.subr.bf16.mxu0 %v1366_v57 }
 0x22d   :  { %v505_v18 = vmax.f32 %v457_v14, 0.0  ;;  %v519_v22 = vpack.c.bf16 %v507_v15, %v506_v19  ;;  %v478_v26 = vadd.f32 %v1205_v16, %v1040_v58 }
 0x22e   :  { %v469_v20 = vpop.f32.mrf.mxu1 }
 0x22f   :  { %v518_v21 = vpack.c.bf16 %v505_v18, %v504_v17  ;;  %v470_v24 = vadd.f32 %v1040_v58, %v469_v20  ;;  %v510_v33 = vmax.f32 %v478_v26, 0.0  ;;  %1278 = vmatpush3.bf16.msra.mxu0 %v1366_v57 }
 0x230   :  { %v1206_v23 = vpop.f32.mrf.mxu1  ;;  %1279 = vmatprep.subr.bf16.mxu0 %v1367_v59 }
 0x231   :  { %v481_v25 = vadd.f32 %v1206_v23, %v1040_v58  ;;  %1231 = vmatprep.mubr.bf16.mxu0 %v518_v21  ;;  %v508_v31 = vmax.f32 %v470_v24, 0.0 }
 0x232   :  { %v472_v27 = vpop.f32.mrf.mxu1  ;;  %1232 = vmatmul.mubr.bf16.gmra.mxu0 %v519_v22 }
 0x233   :  { %v473_v28 = vadd.f32 %v1040_v58, %v472_v27  ;;  %v511_v29 = vmax.f32 %v481_v25, 0.0  ;;  %1280 = vmatpush3.bf16.msra.mxu0 %v1367_v59 }
 0x234   :  { %v1209_v30 = vpop.f32.mrf.mxu1  ;;  %1281 = vmatprep.subr.bf16.mxu0 %v1368_v60 }
 0x235   :  { %v509_v32 = vmax.f32 %v473_v28, 0.0  ;;  %v521_v36 = vpack.c.bf16 %v511_v29, %v510_v33  ;;  %v494_v40 = vadd.f32 %v1209_v30, %v1040_v58 }
 0x236   :  { %v485_v34 = vpop.f32.mrf.mxu1 }
 0x237   :  { %v520_v35 = vpack.c.bf16 %v509_v32, %v508_v31  ;;  %v486_v38 = vadd.f32 %v1040_v58, %v485_v34  ;;  %v514_v53 = vmax.f32 %v494_v40, 0.0  ;;  %1282 = vmatpush3.bf16.msra.mxu0 %v1368_v60 }
 0x238   :  { %v1210_v37 = vpop.f32.mrf.mxu1 }
 0x239   :  { %v497_v39 = vadd.f32 %v1210_v37, %v1040_v58  ;;  %1235 = vmatprep.mubr.bf16.mxu0 %v520_v35  ;;  %v512_v44 = vmax.f32 %v486_v38, 0.0 }
 0x23a   :  { %v488_v41 = vpop.f32.mrf.mxu1  ;;  %1236 = vmatmul.mubr.bf16.gmra.mxu0 %v521_v36 }
 0x23b   :  { %v489_v42 = vadd.f32 %v1040_v58, %v488_v41  ;;  %v515_v43 = vmax.f32 %v497_v39, 0.0  ;;  %v1369_v58 = vld [vmem:[#allocation10 + $0x18] sm:$0xff]  }
 0x23c   :  { %1283 = vmatprep.subr.bf16.mxu0 %v1369_v58 }
 0x23d   :  { %v513_v45 = vmax.f32 %v489_v42, 0.0  ;;  %v523_v55 = vpack.c.bf16 %v515_v43, %v514_v53  ;;  %1284 = vmatpush3.bf16.msra.mxu0 %v1369_v58 }
 0x23f   :  { %v522_v54 = vpack.c.bf16 %v513_v45, %v512_v44 }
 0x241   :  { %1239 = vmatprep.mubr.bf16.mxu0 %v522_v54 }
 0x242   :  { %1240 = vmatmul.mubr.bf16.gmra.mxu0 %v523_v55 }
 0x2ea   :  { %v1229_v61 = vpop.f32.mrf.mxu0 }
 0x2ec   :  { %v622_v62 = vpop.f32.mrf.mxu0 }
 0x2ee   :  { %v1230_v63 = vpop.f32.mrf.mxu0 }
 0x2ef   :  { %v686_v19 = vpack.c.bf16 %v1230_v63, %v1229_v61 }
 0x2f0   :  { %v625_v0 = vpop.f32.mrf.mxu0 }
 0x2f1   :  { %v685_v20 = vpack.c.bf16 %v625_v0, %v622_v62 }
 0x2f2   :  { %v1233_v1 = vpop.f32.mrf.mxu0 }
 0x2f4   :  { %v638_v2 = vpop.f32.mrf.mxu0 }
 0x2f6   :  { %v1234_v3 = vpop.f32.mrf.mxu0 }
 0x2f7   :  { %v688_v17 = vpack.c.bf16 %v1234_v3, %v1233_v1 }
 0x2f8   :  { %v641_v4 = vpop.f32.mrf.mxu0 }
 0x2f9   :  { %v687_v18 = vpack.c.bf16 %v641_v4, %v638_v2 }
 0x2fa   :  { %v1237_v5 = vpop.f32.mrf.mxu0 }
 0x2fc   :  { %v654_v6 = vpop.f32.mrf.mxu0 }
 0x2fe   :  { %v1238_v7 = vpop.f32.mrf.mxu0 }
 0x2ff   :  { %v690_v15 = vpack.c.bf16 %v1238_v7, %v1237_v5 }
 0x300   :  { %v657_v8 = vpop.f32.mrf.mxu0 }
 0x301   :  { %v689_v16 = vpack.c.bf16 %v657_v8, %v654_v6 }
 0x302   :  { %v1241_v9 = vpop.f32.mrf.mxu0 }
 0x304   :  { %v670_v10 = vpop.f32.mrf.mxu0 }
 0x306   :  { %v1242_v11 = vpop.f32.mrf.mxu0 }
 0x307   :  { %v692_v12 = vpack.c.bf16 %v1242_v11, %v1241_v9 }
 0x308   :  { %v673_v13 = vpop.f32.mrf.mxu0 }
 0x309   :  { %v691_v14 = vpack.c.bf16 %v673_v13, %v670_v10  ;;  %1243 = vmatprep.subr.bf16.mxu1 %v692_v12 }
 0x30a   :  { %1244 = vmatpush3.bf16.msra.mxu1 %v692_v12 }
 0x30b   :  { %1245 = vmatprep.subr.bf16.mxu1 %v691_v14 }
 0x30e   :  { %1246 = vmatpush3.bf16.msra.mxu1 %v691_v14 }
 0x30f   :  { %1247 = vmatprep.subr.bf16.mxu1 %v690_v15 }
 0x312   :  { %1248 = vmatpush3.bf16.msra.mxu1 %v690_v15 }
 0x313   :  { %1249 = vmatprep.subr.bf16.mxu1 %v689_v16 }
 0x316   :  { %1250 = vmatpush3.bf16.msra.mxu1 %v689_v16 }
 0x317   :  { %1251 = vmatprep.subr.bf16.mxu1 %v688_v17 }
 0x31a   :  { %1252 = vmatpush3.bf16.msra.mxu1 %v688_v17  ;;  %v1058_v17 = vld [vmem:[%s1637_s7] ss:$0 sm:$0xff]  ;;  %s1508_s7 = smov [#allocation11]  }
 0x31b   :  { %1253 = vmatprep.subr.bf16.mxu1 %v687_v18  ;;  %s1010_s9 = sshll.u32 %s1508_s7, 4  ;;  %s1011_s9 = int_to_ptr.vmem [resolvable:$true] %s1010_s9 }
 0x31c   :  { %s1473_s10 = scalar_lea.vmem %s1011_s9, 2048  ;;  %p1478_p12 = scmp.lt.s32.totalorder %s1011_s9, %s1011_s9 }
 0x31d   :  { %p1474_p11 = scmp.ne.s32.totalorder %s1011_s9, %s1473_s10  ;;  %p1479_p13 = scmp.lt.s32.totalorder %s1473_s10, %s1473_s10 }
 0x31e   :  { %1254 = vmatpush3.bf16.msra.mxu1 %v687_v18 }
 0x31f   :  { %1255 = vmatprep.subr.bf16.mxu1 %v686_v19  ;;  %p1480_p0 = por %p1479_p13, %p1478_p12 }
 0x321   :  { %p1481_p1 = pnand %p1480_p0, %p1474_p11 }
 0x322   :  { %1256 = vmatpush3.bf16.msra.mxu1 %v686_v19 }
 0x323   :  { %1257 = vmatprep.subr.bf16.mxu1 %v685_v20 }
 0x326   :  { %1258 = vmatpush3.bf16.msra.mxu1 %v685_v20 }
 0x327   :  { %1307 = vmatprep.subr.bf16.mxu1 %v1365_v56 }
 0x329   :  { %1260 = vmatmul.mubr.bf16.vlgmr.msra.gmra.mxu1 %v1589_v46  ;;  %v1370_v46 = vld [vmem:[#allocation10 + $0x10] sm:$0xff]  }
 0x32a   :  { %1263 = vmatprep.mubr.bf16.mxu1 %v1591_v47  ;;  %1315 = vmatpush3.bf16.msra.mxu1 %v1365_v56  ;;  %v1371_v47 = vld [vmem:[#allocation10 + $0x8] sm:$0xff]  }
 0x32b   :  { %1308 = vmatprep.subr.bf16.mxu1 %v1366_v57  ;;  %1285 = vmatprep.subr.bf16.mxu0 %v1370_v46 }
 0x32c   :  { %1286 = vmatpush3.bf16.msra.mxu0 %v1370_v46 }
 0x32d   :  { %1287 = vmatprep.subr.bf16.mxu0 %v1371_v47 }
 0x32e   :  { %1316 = vmatpush3.bf16.msra.mxu1 %v1366_v57 }
 0x32f   :  { %1309 = vmatprep.subr.bf16.mxu1 %v1367_v59 }
 0x330   :  { %1288 = vmatpush3.bf16.msra.mxu0 %v1371_v47 }
 0x331   :  { %1264 = vmatmul.mubr.bf16.gmra.mxu1 %v1595_v48  ;;  %v1372_v48 = vld [vmem:[#allocation10] sm:$0xff]  }
 0x332   :  { %1267 = vmatprep.mubr.bf16.mxu1 %v1597_v49  ;;  %1317 = vmatpush3.bf16.msra.mxu1 %v1367_v59 }
 0x333   :  { %1310 = vmatprep.subr.bf16.mxu1 %v1368_v60  ;;  %1289 = vmatprep.subr.bf16.mxu0 %v1372_v48 }
 0x334   :  { %1290 = vmatpush3.bf16.msra.mxu0 %v1372_v48 }
 0x336   :  { %1318 = vmatpush3.bf16.msra.mxu1 %v1368_v60 }
 0x337   :  { %1311 = vmatprep.subr.bf16.mxu1 %v1369_v58 }
 0x339   :  { %1268 = vmatmul.mubr.bf16.gmra.mxu1 %v1601_v50 }
 0x33a   :  { %1271 = vmatprep.mubr.bf16.mxu1 %v1603_v51  ;;  %1319 = vmatpush3.bf16.msra.mxu1 %v1369_v58  ;;  %v1057_v51 = vld [vmem:[%s1635_s5] ss:$0 sm:$0xff] }
 0x33b   :  { %1312 = vmatprep.subr.bf16.mxu1 %v1370_v46 }
 0x33e   :  { %1320 = vmatpush3.bf16.msra.mxu1 %v1370_v46 }
 0x33f   :  { %1313 = vmatprep.subr.bf16.mxu1 %v1371_v47 }
 0x341   :  { %1272 = vmatmul.mubr.bf16.gmra.mxu1 %v1607_v52 }
 0x342   :  { %1321 = vmatpush3.bf16.msra.mxu1 %v1371_v47 }
 0x343   :  { %1314 = vmatprep.subr.bf16.mxu1 %v1372_v48 }
 0x346   :  { %1322 = vmatpush3.bf16.msra.mxu1 %v1372_v48 }
 0x3e9   :  { %v1261_v49 = vpop.f32.mrf.mxu1 }
 0x3ea   :  { %v743_v23 = vadd.f32 %v1261_v49, %v1057_v51 }
 0x3eb   :  { %v734_v50 = vpop.f32.mrf.mxu1 }
 0x3ec   :  { %v735_v21 = vadd.f32 %v1057_v51, %v734_v50  ;;  %v799_v30 = vmax.f32 %v743_v23, 0.0 }
 0x3ed   :  { %v1262_v52 = vpop.f32.mrf.mxu1 }
 0x3ee   :  { %v746_v22 = vadd.f32 %v1262_v52, %v1057_v51  ;;  %v797_v28 = vmax.f32 %v735_v21, 0.0 }
 0x3ef   :  { %v737_v24 = vpop.f32.mrf.mxu1 }
 0x3f0   :  { %v738_v25 = vadd.f32 %v1057_v51, %v737_v24  ;;  %v800_v26 = vmax.f32 %v746_v22, 0.0 }
 0x3f1   :  { %v1265_v27 = vpop.f32.mrf.mxu1 }
 0x3f2   :  { %v798_v29 = vmax.f32 %v738_v25, 0.0  ;;  %v814_v33 = vpack.c.bf16 %v800_v26, %v799_v30  ;;  %v759_v37 = vadd.f32 %v1265_v27, %v1057_v51 }
 0x3f3   :  { %v750_v31 = vpop.f32.mrf.mxu1 }
 0x3f4   :  { %v813_v32 = vpack.c.bf16 %v798_v29, %v797_v28  ;;  %v751_v35 = vadd.f32 %v1057_v51, %v750_v31  ;;  %v803_v44 = vmax.f32 %v759_v37, 0.0 }
 0x3f5   :  { %v1266_v34 = vpop.f32.mrf.mxu1 }
 0x3f6   :  { %v762_v36 = vadd.f32 %v1266_v34, %v1057_v51  ;;  %1291 = vmatprep.mubr.bf16.mxu0 %v813_v32  ;;  %v801_v42 = vmax.f32 %v751_v35, 0.0 }
 0x3f7   :  { %v753_v38 = vpop.f32.mrf.mxu1  ;;  %1292 = vmatmul.mubr.bf16.vlgmr.msra.gmra.mxu0 %v814_v33 }
 0x3f8   :  { %v754_v39 = vadd.f32 %v1057_v51, %v753_v38  ;;  %v804_v40 = vmax.f32 %v762_v36, 0.0 }
 0x3f9   :  { %v1269_v41 = vpop.f32.mrf.mxu1 }
 0x3fa   :  { %v802_v43 = vmax.f32 %v754_v39, 0.0  ;;  %v816_v54 = vpack.c.bf16 %v804_v40, %v803_v44  ;;  %v775_v59 = vadd.f32 %v1269_v41, %v1057_v51 }
 0x3fb   :  { %v766_v45 = vpop.f32.mrf.mxu1 }
 0x3fc   :  { %v815_v53 = vpack.c.bf16 %v802_v43, %v801_v42  ;;  %v767_v56 = vadd.f32 %v1057_v51, %v766_v45  ;;  %v807_v1 = vmax.f32 %v775_v59, 0.0 }
 0x3fd   :  { %v1270_v55 = vpop.f32.mrf.mxu1 }
 0x3fe   :  { %v778_v57 = vadd.f32 %v1270_v55, %v1057_v51  ;;  %1295 = vmatprep.mubr.bf16.mxu0 %v815_v53  ;;  %v805_v63 = vmax.f32 %v767_v56, 0.0 }
 0x3ff   :  { %v769_v60 = vpop.f32.mrf.mxu1  ;;  %1296 = vmatmul.mubr.bf16.gmra.mxu0 %v816_v54 }
 0x400   :  { %v770_v58 = vadd.f32 %v1057_v51, %v769_v60  ;;  %v808_v61 = vmax.f32 %v778_v57, 0.0 }
 0x401   :  { %v1273_v62 = vpop.f32.mrf.mxu1 }
 0x402   :  { %v806_v0 = vmax.f32 %v770_v58, 0.0  ;;  %v818_v4 = vpack.c.bf16 %v808_v61, %v807_v1  ;;  %v791_v8 = vadd.f32 %v1273_v62, %v1057_v51 }
 0x403   :  { %v782_v2 = vpop.f32.mrf.mxu1 }
 0x404   :  { %v817_v3 = vpack.c.bf16 %v806_v0, %v805_v63  ;;  %v783_v6 = vadd.f32 %v1057_v51, %v782_v2  ;;  %v811_v14 = vmax.f32 %v791_v8, 0.0 }
 0x405   :  { %v1274_v5 = vpop.f32.mrf.mxu1 }
 0x406   :  { %v794_v7 = vadd.f32 %v1274_v5, %v1057_v51  ;;  %1299 = vmatprep.mubr.bf16.mxu1 %v817_v3  ;;  %v809_v12 = vmax.f32 %v783_v6, 0.0 }
 0x407   :  { %v785_v9 = vpop.f32.mrf.mxu1  ;;  %1300 = vmatmul.mubr.bf16.vlgmr.msra.gmra.mxu1 %v818_v4 }
 0x408   :  { %v786_v10 = vadd.f32 %v1057_v51, %v785_v9  ;;  %v812_v11 = vmax.f32 %v794_v7, 0.0 }
 0x40a   :  { %v810_v13 = vmax.f32 %v786_v10, 0.0  ;;  %v820_v16 = vpack.c.bf16 %v812_v11, %v811_v14 }
 0x40c   :  { %v819_v15 = vpack.c.bf16 %v810_v13, %v809_v12 }
 0x40e   :  { %1303 = vmatprep.mubr.bf16.mxu1 %v819_v15 }
 0x40f   :  { %1304 = vmatmul.mubr.bf16.gmra.mxu1 %v820_v16 }
 0x4b7   :  { %v1293_v18 = vpop.f32.mrf.mxu0 }
 0x4b8   :  { %v935_v19 = vadd.f32 %v1293_v18, %v1058_v17 }
 0x4b9   :  { %v926_v20 = vpop.f32.mrf.mxu0 }
 0x4ba   :  { %991 = vst [vmem:[#allocation11 + $0x10] sm:$0xff] %v935_v19  ;;  %v927_v46 = vadd.f32 %v1058_v17, %v926_v20 }
 0x4bb   :  { %v1294_v47 = vpop.f32.mrf.mxu0 }
 0x4bc   :  { %989 = vst [vmem:[#allocation11] sm:$0xff] %v927_v46  ;;  %v938_v48 = vadd.f32 %v1294_v47, %v1058_v17 }
 0x4bd   :  { %v929_v49 = vpop.f32.mrf.mxu0 }
 0x4be   :  { %992 = vst [vmem:[#allocation11 + $0x18] sm:$0xff] %v938_v48  ;;  %v930_v50 = vadd.f32 %v1058_v17, %v929_v49 }
 0x4bf   :  { %v1297_v51 = vpop.f32.mrf.mxu0 }
 0x4c0   :  { %990 = vst [vmem:[#allocation11 + $0x8] sm:$0xff] %v930_v50  ;;  %v951_v52 = vadd.f32 %v1297_v51, %v1058_v17 }
 0x4c1   :  { %v942_v21 = vpop.f32.mrf.mxu0 }
 0x4c2   :  { %995 = vst [vmem:[#allocation11 + $0x30] sm:$0xff] %v951_v52  ;;  %v943_v22 = vadd.f32 %v1058_v17, %v942_v21 }
 0x4c3   :  { %v1298_v23 = vpop.f32.mrf.mxu0 }
 0x4c4   :  { %993 = vst [vmem:[#allocation11 + $0x20] sm:$0xff] %v943_v22  ;;  %v954_v24 = vadd.f32 %v1298_v23, %v1058_v17 }
 0x4c5   :  { %v945_v25 = vpop.f32.mrf.mxu0 }
 0x4c6   :  { %996 = vst [vmem:[#allocation11 + $0x38] sm:$0xff] %v954_v24  ;;  %v946_v26 = vadd.f32 %v1058_v17, %v945_v25 }
 0x4c7   :  { %v1301_v27 = vpop.f32.mrf.mxu1 }
 0x4c8   :  { %994 = vst [vmem:[#allocation11 + $0x28] sm:$0xff] %v946_v26  ;;  %v967_v28 = vadd.f32 %v1301_v27, %v1058_v17 }
 0x4c9   :  { %v958_v29 = vpop.f32.mrf.mxu1 }
 0x4ca   :  { %999 = vst [vmem:[#allocation11 + $0x50] sm:$0xff] %v967_v28  ;;  %v959_v30 = vadd.f32 %v1058_v17, %v958_v29 }
 0x4cb   :  { %v1302_v31 = vpop.f32.mrf.mxu1 }
 0x4cc   :  { %997 = vst [vmem:[#allocation11 + $0x40] sm:$0xff] %v959_v30  ;;  %v970_v32 = vadd.f32 %v1302_v31, %v1058_v17 }
 0x4cd   :  { %v961_v33 = vpop.f32.mrf.mxu1 }
 0x4ce   :  { %1000 = vst [vmem:[#allocation11 + $0x58] sm:$0xff] %v970_v32  ;;  %v962_v34 = vadd.f32 %v1058_v17, %v961_v33 }
 0x4cf   :  { %v1305_v35 = vpop.f32.mrf.mxu1 }
 0x4d0   :  { %998 = vst [vmem:[#allocation11 + $0x48] sm:$0xff] %v962_v34  ;;  %v983_v36 = vadd.f32 %v1305_v35, %v1058_v17 }
 0x4d1   :  { %v974_v37 = vpop.f32.mrf.mxu1 }
 0x4d2   :  { %1003 = vst [vmem:[#allocation11 + $0x70] sm:$0xff] %v983_v36  ;;  %v975_v38 = vadd.f32 %v1058_v17, %v974_v37 }
 0x4d3   :  { %v1306_v39 = vpop.f32.mrf.mxu1 }
 0x4d4   :  { %1001 = vst [vmem:[#allocation11 + $0x60] sm:$0xff] %v975_v38  ;;  %v986_v40 = vadd.f32 %v1306_v39, %v1058_v17 }
 0x4d5   :  { %v977_v41 = vpop.f32.mrf.mxu1 }
 0x4d6   :  { %1004 = vst [vmem:[#allocation11 + $0x78] sm:$0xff] %v986_v40  ;;  %v978_v42 = vadd.f32 %v1058_v17, %v977_v41 }
 0x4d8   :  { %1002 = vst [vmem:[#allocation11 + $0x68] sm:$0xff] %v978_v42 }
 0x4d9   :  { %1484 = shalt.err (!%p1481_p1)
}
 0x4da   :  { %s1509_s11 = smov 128   ;;  %s1510_s12 = smov 8  }
 0x4db   :  { %1016 = dma.vmem_to_hbm [thread:$0]  %s1011_s9, 2048, %s1638_s8, [#allocation4], %s1509_s11, %s1509_s11, %s1510_s12  }
 0x4dc   :  { %1499 = dma.done.wait [#allocation4], 2048  }
 0x4dd   :  { %1500 = vsyncadd [#allocation4], 4294965248 }
 0x4de   :  { %1020 = vsyncpa [#allocation3], 1 }
 0x4df   :  { %1021 = vsyncpa [#allocation6], 1 }
 0x4e0   :  { %1022 = vsyncpa [#allocation9], 1 }
 0x4e1   :  { %1023 = vsyncpa [#allocation4], 1 }

</bundles_post_ra>
